<compile_context>
chip_gen: v5e
topology: v5e:2x2
jax: 0.10.0
libtpu: 0.0.40
codegen_flags: <defaults>
</compile_context>

<pallas_src>
import jax
import jax.numpy as jnp
from jax.experimental import pallas as pl
from jax.experimental.pallas import tpu as pltpu


# ----------------------------------------------------------------------------
# VMEM limit helper: request what we need, clamp to this generation's VMEM.
# ----------------------------------------------------------------------------
def _vmem_limit(resident_bytes):
    try:
        phys = int(pltpu.get_tpu_info().vmem_capacity_bytes)  # 128 MiB v5e/v6e, 64 MiB v7x
    except Exception:
        phys = 64 * 1024 * 1024
    want = 2 * int(resident_bytes) + (4 << 20)                 # buffering + slack
    return int(min(max(want, 32 << 20), (phys * 3) // 4))


# ----------------------------------------------------------------------------
# Fold the RNN input projection into the embedding table:  E' = E @ W_ih + b.
# Tiled over vocab rows; per-token projection then becomes an XLA gather.
# ----------------------------------------------------------------------------
def _embed_proj_kernel(e_ref, w_ref, b_ref, o_ref):
    o_ref[...] = (
        jnp.dot(e_ref[...], w_ref[...], preferred_element_type=jnp.float32)
        + b_ref[...]
    ).astype(o_ref.dtype)


def project_embedding(table, w_ih, b, row_block=256):
    v, h = table.shape
    if v <= row_block:
        rb, v_pad = v, v
    else:
        rb = row_block
        v_pad = -(-v // rb) * rb
        if v_pad != v:
            table = jnp.pad(table, ((0, v_pad - v), (0, 0)))
    out = pl.pallas_call(
        _embed_proj_kernel,
        out_shape=jax.ShapeDtypeStruct((v_pad, h), jnp.bfloat16),
        grid=(v_pad // rb,),
        in_specs=[
            pl.BlockSpec((rb, h), lambda i: (i, 0)),
            pl.BlockSpec((h, h), lambda i: (0, 0)),
            pl.BlockSpec((1, h), lambda i: (0, 0)),
        ],
        out_specs=pl.BlockSpec((rb, h), lambda i: (i, 0)),
        compiler_params=pltpu.CompilerParams(dimension_semantics=("parallel",)),
    )(table, w_ih, b)
    return out[:v]


# ----------------------------------------------------------------------------
# Encoder kernel: tanh RNN, one grid step per source time step (sequential).
#   h_t = tanh(xp_t + h_{t-1} @ W_hh), gated by source lengths (padding steps
#   do not advance the state).  Memory bank is a RESIDENT (T,B,H) bf16 output
#   (single writeback); hfinal is the per-example true final hidden state.
# ----------------------------------------------------------------------------
def _encoder_rnn_kernel(xp_ref, w_hh_ref, len_ref, mem_ref, hfin_ref, h_scr):
    t = pl.program_id(0)

    @pl.when(t == 0)
    def _():
        h_scr[...] = jnp.zeros_like(h_scr)

    h_prev = h_scr[...]                                              # (B, H) f32
    h_new = jnp.tanh(
        xp_ref[0].astype(jnp.float32)
        + jnp.dot(h_prev.astype(jnp.bfloat16), w_hh_ref[...],
                  preferred_element_type=jnp.float32)
    )
    valid = len_ref[...] > t                                         # (B, 1) bool
    h = jnp.where(valid, h_new, h_prev)
    h_scr[...] = h

    mem_ref[t] = h.astype(mem_ref.dtype)                             # resident write
    hfin_ref[...] = h                                                # resident final h


def run_encoder(xp, w_hh, lengths_b1):
    t, b, h = xp.shape
    est = t * b * h * 2 + b * h * 8 + h * h * 2 + 2 * b * h * 2
    return pl.pallas_call(
        _encoder_rnn_kernel,
        out_shape=(
            jax.ShapeDtypeStruct((t, b, h), jnp.bfloat16),   # memory bank (src-major)
            jax.ShapeDtypeStruct((b, h), jnp.float32),       # final hidden state
        ),
        grid=(t,),
        in_specs=[
            pl.BlockSpec((1, b, h), lambda i: (i, 0, 0)),    # pre-projected src step
            pl.BlockSpec((h, h), lambda i: (0, 0)),          # W_hh (resident)
            pl.BlockSpec((b, 1), lambda i: (0, 0)),          # lengths (resident)
        ],
        out_specs=(
            pl.BlockSpec((t, b, h), lambda i: (0, 0, 0)),    # resident -> one writeback
            pl.BlockSpec((b, h), lambda i: (0, 0)),
        ),
        scratch_shapes=[pltpu.VMEM((b, h), jnp.float32)],
        compiler_params=pltpu.CompilerParams(
            dimension_semantics=("arbitrary",),
            vmem_limit_bytes=_vmem_limit(est),
        ),
    )(xp, w_hh, lengths_b1)


# ----------------------------------------------------------------------------
# Decoder RNN kernel: hidden recurrence only (attention is batched separately).
#   h_t = tanh(xp_t + h_{t-1} @ W_hh); h_0 comes from decoder.init_state.
# ----------------------------------------------------------------------------
def _decoder_rnn_kernel(h0_ref, xp_ref, w_hh_ref, hall_ref, h_scr):
    t = pl.program_id(0)

    @pl.when(t == 0)
    def _():
        h_scr[...] = h0_ref[...]          # init_state: encoder final hidden

    h = jnp.tanh(
        xp_ref[0].astype(jnp.float32)
        + jnp.dot(h_scr[...].astype(jnp.bfloat16), w_hh_ref[...],
                  preferred_element_type=jnp.float32)
    )
    h_scr[...] = h
    hall_ref[t] = h.astype(hall_ref.dtype)                           # resident write


def run_decoder_rnn(h0, xp, w_hh):
    t, b, h = xp.shape
    est = t * b * h * 2 + b * h * 8 + h * h * 2 + 2 * b * h * 2
    return pl.pallas_call(
        _decoder_rnn_kernel,
        out_shape=jax.ShapeDtypeStruct((t, b, h), jnp.bfloat16),
        grid=(t,),
        in_specs=[
            pl.BlockSpec((b, h), lambda i: (0, 0)),          # h0 (resident)
            pl.BlockSpec((1, b, h), lambda i: (i, 0, 0)),    # pre-projected tgt step
            pl.BlockSpec((h, h), lambda i: (0, 0)),          # W_hh (resident)
        ],
        out_specs=pl.BlockSpec((t, b, h), lambda i: (0, 0, 0)),
        scratch_shapes=[pltpu.VMEM((b, h), jnp.float32)],
        compiler_params=pltpu.CompilerParams(
            dimension_semantics=("arbitrary",),
            vmem_limit_bytes=_vmem_limit(est),
        ),
    )(h0, xp, w_hh)


# ----------------------------------------------------------------------------
# Batched Luong dot attention + output projection.
#   grid = (batch, q-tiles); per step all matmuls are 2-D with M = q-tile rows:
#     scores = Hq @ M^T + mask ; alpha = softmax(scores)
#     ctx    = alpha @ M
#     out    = tanh(ctx @ W_c + Hq @ W_h)
# ----------------------------------------------------------------------------
def _attention_kernel(h_ref, mem_ref, mask_ref, w_c_ref, w_h_ref, dec_ref, attn_ref):
    h = h_ref[0]                                                     # (TQ, H) bf16
    mem = mem_ref[0]                                                 # (S,  H) bf16

    scores = jnp.dot(h, mem.T, preferred_element_type=jnp.float32)   # (TQ, S) MXU
    scores = scores + mask_ref[0]                                    # length mask (1,S)
    scores = scores - jnp.max(scores, axis=-1, keepdims=True)
    e = jnp.exp(scores)
    inv = pl.reciprocal(jnp.sum(e, axis=-1, keepdims=True), approx=True)
    alpha = e * inv                                                  # (TQ, S) f32

    ctx = jnp.dot(alpha.astype(jnp.bfloat16), mem,
                  preferred_element_type=jnp.float32)                # (TQ, H) MXU
    out = jnp.tanh(
        jnp.dot(ctx.astype(jnp.bfloat16), w_c_ref[...],
                preferred_element_type=jnp.float32)
        + jnp.dot(h, w_h_ref[...], preferred_element_type=jnp.float32)
    )

    dec_ref[0] = out.astype(dec_ref.dtype)
    attn_ref[0] = alpha.astype(attn_ref.dtype)


def run_attention(h_bth, mem_bsh, mask_b1s, w_c, w_h, q_block=128):
    b, t, hdim = h_bth.shape
    s = mem_bsh.shape[1]
    if t <= q_block:
        tq, t_pad = t, t
    else:
        tq = q_block
        t_pad = -(-t // tq) * tq
        if t_pad != t:
            h_bth = jnp.pad(h_bth, ((0, 0), (0, t_pad - t), (0, 0)))
    est = (tq * hdim * 2 + s * hdim * 2 + s * 4 + 2 * hdim * hdim * 2
           + tq * hdim * 4 + tq * s * 4)
    dec, attn = pl.pallas_call(
        _attention_kernel,
        out_shape=(
            jax.ShapeDtypeStruct((b, t_pad, hdim), jnp.float32),
            jax.ShapeDtypeStruct((b, t_pad, s), jnp.float32),
        ),
        grid=(b, t_pad // tq),
        in_specs=[
            pl.BlockSpec((1, tq, hdim), lambda i, j: (i, j, 0)),   # query tile
            pl.BlockSpec((1, s, hdim), lambda i, j: (i, 0, 0)),    # memory bank slice
            pl.BlockSpec((1, 1, s), lambda i, j: (i, 0, 0)),       # length mask
            pl.BlockSpec((hdim, hdim), lambda i, j: (0, 0)),       # W_c
            pl.BlockSpec((hdim, hdim), lambda i, j: (0, 0)),       # W_h
        ],
        out_specs=(
            pl.BlockSpec((1, tq, hdim), lambda i, j: (i, j, 0)),
            pl.BlockSpec((1, tq, s), lambda i, j: (i, j, 0)),
        ),
        compiler_params=pltpu.CompilerParams(
            dimension_semantics=("parallel", "parallel"),
            vmem_limit_bytes=_vmem_limit(est),
        ),
    )(h_bth, mem_bsh, mask_b1s, w_c, w_h)
    return dec[:, :t], attn[:, :t]


# ----------------------------------------------------------------------------
# Parameters & forward wrapper
# ----------------------------------------------------------------------------
def init_params(key, v_src, v_tgt, hidden):
    def xavier(k, shape):
        fan_in, fan_out = shape[-2], shape[-1]
        lim = jnp.sqrt(6.0 / (fan_in + fan_out))
        return jax.random.uniform(k, shape, jnp.float32, -lim, lim)

    keys = jax.random.split(key, 8)
    return {
        "E_src": xavier(keys[0], (v_src, hidden)).astype(jnp.bfloat16),
        "E_tgt": xavier(keys[1], (v_tgt, hidden)).astype(jnp.bfloat16),
        "enc_w_ih": xavier(keys[2], (hidden, hidden)).astype(jnp.bfloat16),
        "enc_w_hh": xavier(keys[3], (hidden, hidden)).astype(jnp.bfloat16),
        "enc_b": jnp.zeros((1, hidden), jnp.float32),
        "dec_w_ih": xavier(keys[4], (hidden, hidden)).astype(jnp.bfloat16),
        "dec_w_hh": xavier(keys[5], (hidden, hidden)).astype(jnp.bfloat16),
        "dec_b": jnp.zeros((1, hidden), jnp.float32),
        "dec_w_c": xavier(keys[6], (hidden, hidden)).astype(jnp.bfloat16),
        "dec_w_h": xavier(keys[7], (hidden, hidden)).astype(jnp.bfloat16),
    }


def nmt_forward(params, src, tgt, lengths):
    """Mirrors NMTModel.forward(src, tgt, lengths) -> (dec_out, attns)."""
    t_src, b = src.shape
    t_tgt = tgt.shape[0]

    # --- fold input projection into embedding tables, then gather (XLA glue) ---
    e_src_p = project_embedding(params["E_src"], params["enc_w_ih"], params["enc_b"])
    e_tgt_p = project_embedding(params["E_tgt"], params["dec_w_ih"], params["dec_b"])
    src_xp = e_src_p[src]                                 # (T_src, B, H) bf16
    tgt_xp = e_tgt_p[tgt]                                 # (T_tgt, B, H) bf16

    # --- encoder: length-gated tanh RNN -> memory bank + final hidden ---
    lengths = lengths.astype(jnp.int32)
    mem_tbh, h0 = run_encoder(src_xp, params["enc_w_hh"], lengths.reshape(b, 1))

    # --- decoder.init_state(src, memory_bank) + decoder RNN (hidden states only) ---
    hdec_tbh = run_decoder_rnn(h0, tgt_xp, params["dec_w_hh"])

    # --- batched attention over all target steps (layout plumbing in XLA) ---
    mem_bsh = jnp.transpose(mem_tbh, (1, 0, 2))           # (B, S, H) bf16
    hdec_bth = jnp.transpose(hdec_tbh, (1, 0, 2))         # (B, T_tgt, H) bf16
    mask = jnp.where(
        jnp.arange(t_src)[None, None, :] < lengths[:, None, None], 0.0, -1e9
    ).astype(jnp.float32)                                 # (B, 1, S)

    dec_bth, attn_bts = run_attention(hdec_bth, mem_bsh, mask,
                                      params["dec_w_c"], params["dec_w_h"])
    dec_out = jnp.transpose(dec_bth, (1, 0, 2))           # (T_tgt, B, H)
    attns = {"std": jnp.transpose(attn_bts, (1, 0, 2))}   # (T_tgt, B, T_src)
    return dec_out, attns


if __name__ == "__main__":
    T_SRC, T_TGT, B, H = 8, 8, 2, 32
    V_SRC, V_TGT = 16, 20

    key = jax.random.PRNGKey(0)
    kp, ks, kt = jax.random.split(key, 3)
    params = init_params(kp, V_SRC, V_TGT, H)

    src = jax.random.randint(ks, (T_SRC, B), 0, V_SRC, dtype=jnp.int32)
    tgt = jax.random.randint(kt, (T_TGT, B), 0, V_TGT, dtype=jnp.int32)
    lengths = jnp.array([T_SRC, 5], dtype=jnp.int32)

    fwd = jax.jit(nmt_forward)
    dec_out, attns = fwd(params, src, tgt, lengths)
    dec_out = jax.block_until_ready(dec_out)
    attn_std = jax.block_until_ready(attns["std"])

    assert dec_out.shape == (T_TGT, B, H)
    assert attn_std.shape == (T_TGT, B, T_SRC)
    # attention rows sum to ~1 (approx reciprocal + bf16 matmuls -> loose tol)
    assert bool(jnp.allclose(jnp.sum(attn_std, axis=-1), 1.0, atol=1e-2))
    # padded source positions of example 1 (length 5) receive no attention
    assert float(jnp.max(attn_std[:, 1, 5:])) < 1e-3
    print("KERNEL_OK")
</pallas_src>

<mosaic_0001>
module attributes {stable_mosaic.version = 11 : i64} {
  func.func @_embed_proj_kernel(%arg0: i32, %arg1: memref<16x32xbf16, #tpu.memory_space<vmem>>, %arg2: memref<32x32xbf16, #tpu.memory_space<vmem>>, %arg3: memref<1x32xf32, #tpu.memory_space<vmem>>, %arg4: memref<16x32xbf16, #tpu.memory_space<vmem>>) attributes {dimension_semantics = [#tpu.dimension_semantics<parallel>], iteration_bounds = array<i64: 1>, scalar_prefetch = 0 : i64, scratch_operands = 0 : i64, tpu.core_type = #tpu.core_type<tc>, window_params = [{transform_indices = @transform_0, window_bounds = array<i64: 16, 32>}, {pipeline_mode = #tpu.pipeline_mode<synchronous>, transform_indices = @transform_1, window_bounds = array<i64: 32, 32>}, {pipeline_mode = #tpu.pipeline_mode<synchronous>, transform_indices = @transform_2, window_bounds = array<i64: 1, 32>}, {transform_indices = @transform_3, window_bounds = array<i64: 16, 32>}]} {
    %c0 = arith.constant 0 : index
    %c0_0 = arith.constant 0 : index
    %0 = vector.load %arg1[%c0, %c0_0] : memref<16x32xbf16, #tpu.memory_space<vmem>>, vector<16x32xbf16>
    %c0_1 = arith.constant 0 : index
    %c0_2 = arith.constant 0 : index
    %1 = vector.load %arg2[%c0_1, %c0_2] : memref<32x32xbf16, #tpu.memory_space<vmem>>, vector<32x32xbf16>
    %cst = arith.constant dense<0.000000e+00> : vector<16x32xf32>
    %2 = tpu.matmul %0, %1, %cst {dimension_numbers = #tpu.dot_dimension_numbers<[1], [0], [0], [1], [0, 0, 1, 1], [], []>} : vector<16x32xbf16>, vector<32x32xbf16>, vector<16x32xf32> -> vector<16x32xf32>
    %c0_3 = arith.constant 0 : index
    %c0_4 = arith.constant 0 : index
    %3 = vector.load %arg3[%c0_3, %c0_4] : memref<1x32xf32, #tpu.memory_space<vmem>>, vector<1x32xf32>
    %4 = vector.broadcast %3 : vector<1x32xf32> to vector<16x32xf32>
    %5 = arith.addf %2, %4 : vector<16x32xf32>
    %6 = arith.truncf %5 : vector<16x32xf32> to vector<16x32xbf16>
    %c0_5 = arith.constant 0 : index
    %c0_6 = arith.constant 0 : index
    %7 = vector.load %arg4[%c0_5, %c0_6] : memref<16x32xbf16, #tpu.memory_space<vmem>>, vector<16x32xbf16>
    tpu.vector_store %arg4[%c0_5, %c0_6], %6 {strides = array<i32>} : memref<16x32xbf16, #tpu.memory_space<vmem>>, vector<16x32xbf16>,
    return
  }
  func.func @transform_0(%arg0: i32) -> (i32, i32) {
    %c0_i32 = arith.constant 0 : i32
    %c0_i32_0 = arith.constant 0 : i32
    return %arg0, %c0_i32 : i32, i32
  }
  func.func @transform_1(%arg0: i32) -> (i32, i32) {
    %c0_i32 = arith.constant 0 : i32
    %c0_i32_0 = arith.constant 0 : i32
    %c0_i32_1 = arith.constant 0 : i32
    return %c0_i32, %c0_i32_0 : i32, i32
  }
  func.func @transform_2(%arg0: i32) -> (i32, i32) {
    %c0_i32 = arith.constant 0 : i32
    %c0_i32_0 = arith.constant 0 : i32
    %c0_i32_1 = arith.constant 0 : i32
    return %c0_i32, %c0_i32_0 : i32, i32
  }
  func.func @transform_3(%arg0: i32) -> (i32, i32) {
    %c0_i32 = arith.constant 0 : i32
    %c0_i32_0 = arith.constant 0 : i32
    return %arg0, %c0_i32 : i32, i32
  }
}

module attributes {stable_mosaic.version = 11 : i64} {
  func.func @_encoder_rnn_kernel(%arg0: i32, %arg1: memref<1x2x32xbf16, #tpu.memory_space<vmem>>, %arg2: memref<32x32xbf16, #tpu.memory_space<vmem>>, %arg3: memref<2x1xi32, #tpu.memory_space<vmem>>, %arg4: memref<8x2x32xbf16, #tpu.memory_space<vmem>>, %arg5: memref<2x32xf32, #tpu.memory_space<vmem>>, %arg6: memref<2x32xf32, #tpu.memory_space<vmem>>) attributes {dimension_semantics = [#tpu.dimension_semantics<arbitrary>], iteration_bounds = array<i64: 8>, scalar_prefetch = 0 : i64, scratch_operands = 1 : i64, tpu.core_type = #tpu.core_type<tc>, window_params = [{transform_indices = @transform_0, window_bounds = array<i64: 1, 2, 32>}, {pipeline_mode = #tpu.pipeline_mode<synchronous>, transform_indices = @transform_1, window_bounds = array<i64: 32, 32>}, {pipeline_mode = #tpu.pipeline_mode<synchronous>, transform_indices = @transform_2, window_bounds = array<i64: 2, 1>}, {pipeline_mode = #tpu.pipeline_mode<synchronous>, transform_indices = @transform_3, window_bounds = array<i64: 8, 2, 32>}, {pipeline_mode = #tpu.pipeline_mode<synchronous>, transform_indices = @transform_4, window_bounds = array<i64: 2, 32>}]} {
    %c0_i32 = arith.constant 0 : i32
    %0 = arith.cmpi eq, %arg0, %c0_i32 : i32
    %1 = arith.extui %0 : i1 to i32
    %c0_i32_0 = arith.constant 0 : i32
    %2 = arith.cmpi ne, %1, %c0_i32_0 : i32
    scf.if %2 {
      %cst_15 = arith.constant 0.000000e+00 : f32
      %25 = vector.broadcast %cst_15 : f32 to vector<2x32xf32>
      %c0_16 = arith.constant 0 : index
      %c0_17 = arith.constant 0 : index
      %26 = vector.load %arg6[%c0_16, %c0_17] : memref<2x32xf32, #tpu.memory_space<vmem>>, vector<2x32xf32>
      tpu.vector_store %arg6[%c0_16, %c0_17], %25 {strides = array<i32>} : memref<2x32xf32, #tpu.memory_space<vmem>>, vector<2x32xf32>,
    } else {
    }
    %c0 = arith.constant 0 : index
    %c0_1 = arith.constant 0 : index
    %3 = vector.load %arg6[%c0, %c0_1] : memref<2x32xf32, #tpu.memory_space<vmem>>, vector<2x32xf32>
    %c0_2 = arith.constant 0 : index
    %c0_3 = arith.constant 0 : index
    %c0_4 = arith.constant 0 : index
    %4 = vector.load %arg1[%c0_2, %c0_3, %c0_4] : memref<1x2x32xbf16, #tpu.memory_space<vmem>>, vector<1x2x32xbf16>
    %5 = vector.shape_cast %4 : vector<1x2x32xbf16> to vector<2x32xbf16>
    %6 = arith.extf %5 : vector<2x32xbf16> to vector<2x32xf32>
    %7 = arith.truncf %3 : vector<2x32xf32> to vector<2x32xbf16>
    %c0_5 = arith.constant 0 : index
    %c0_6 = arith.constant 0 : index
    %8 = vector.load %arg2[%c0_5, %c0_6] : memref<32x32xbf16, #tpu.memory_space<vmem>>, vector<32x32xbf16>
    %cst = arith.constant dense<0.000000e+00> : vector<2x32xf32>
    %9 = tpu.matmul %7, %8, %cst {dimension_numbers = #tpu.dot_dimension_numbers<[1], [0], [0], [1], [0, 0, 1, 1], [], []>} : vector<2x32xbf16>, vector<32x32xbf16>, vector<2x32xf32> -> vector<2x32xf32>
    %10 = arith.addf %6, %9 : vector<2x32xf32>
    %11 = math.tanh %10 : vector<2x32xf32>
    %c0_7 = arith.constant 0 : index
    %c0_8 = arith.constant 0 : index
    %12 = vector.load %arg3[%c0_7, %c0_8] : memref<2x1xi32, #tpu.memory_space<vmem>>, vector<2x1xi32>
    %13 = vector.broadcast %arg0 : i32 to vector<2x1xi32>
    %14 = arith.cmpi sgt, %12, %13 : vector<2x1xi32>
    %15 = vector.shape_cast %14 : vector<2x1xi1> to vector<2x1xi1>
    %16 = vector.broadcast %15 : vector<2x1xi1> to vector<2x32xi1>
    %17 = arith.select %16, %11, %3 : vector<2x32xi1>, vector<2x32xf32>
    %c0_9 = arith.constant 0 : index
    %c0_10 = arith.constant 0 : index
    %18 = vector.load %arg6[%c0_9, %c0_10] : memref<2x32xf32, #tpu.memory_space<vmem>>, vector<2x32xf32>
    tpu.vector_store %arg6[%c0_9, %c0_10], %17 {strides = array<i32>} : memref<2x32xf32, #tpu.memory_space<vmem>>, vector<2x32xf32>,
    %19 = arith.truncf %17 : vector<2x32xf32> to vector<2x32xbf16>
    %20 = arith.index_cast %arg0 : i32 to index
    %c0_11 = arith.constant 0 : index
    %c0_12 = arith.constant 0 : index
    %21 = vector.load %arg4[%20, %c0_11, %c0_12] : memref<8x2x32xbf16, #tpu.memory_space<vmem>>, vector<1x2x32xbf16>
    %22 = vector.shape_cast %21 : vector<1x2x32xbf16> to vector<2x32xbf16>
    %23 = vector.shape_cast %19 : vector<2x32xbf16> to vector<1x2x32xbf16>
    tpu.vector_store %arg4[%20, %c0_11, %c0_12], %23 {strides = array<i32>} : memref<8x2x32xbf16, #tpu.memory_space<vmem>>, vector<1x2x32xbf16>,
    %c0_13 = arith.constant 0 : index
    %c0_14 = arith.constant 0 : index
    %24 = vector.load %arg5[%c0_13, %c0_14] : memref<2x32xf32, #tpu.memory_space<vmem>>, vector<2x32xf32>
    tpu.vector_store %arg5[%c0_13, %c0_14], %17 {strides = array<i32>} : memref<2x32xf32, #tpu.memory_space<vmem>>, vector<2x32xf32>,
    return
  }
  func.func @transform_0(%arg0: i32) -> (i32, i32, i32) {
    %c0_i32 = arith.constant 0 : i32
    %c0_i32_0 = arith.constant 0 : i32
    %c0_i32_1 = arith.constant 0 : i32
    return %arg0, %c0_i32, %c0_i32_0 : i32, i32, i32
  }
  func.func @transform_1(%arg0: i32) -> (i32, i32) {
    %c0_i32 = arith.constant 0 : i32
    %c0_i32_0 = arith.constant 0 : i32
    %c0_i32_1 = arith.constant 0 : i32
    return %c0_i32, %c0_i32_0 : i32, i32
  }
  func.func @transform_2(%arg0: i32) -> (i32, i32) {
    %c0_i32 = arith.constant 0 : i32
    %c0_i32_0 = arith.constant 0 : i32
    %c0_i32_1 = arith.constant 0 : i32
    return %c0_i32, %c0_i32_0 : i32, i32
  }
  func.func @transform_3(%arg0: i32) -> (i32, i32, i32) {
    %c0_i32 = arith.constant 0 : i32
    %c0_i32_0 = arith.constant 0 : i32
    %c0_i32_1 = arith.constant 0 : i32
    %c0_i32_2 = arith.constant 0 : i32
    return %c0_i32, %c0_i32_0, %c0_i32_1 : i32, i32, i32
  }
  func.func @transform_4(%arg0: i32) -> (i32, i32) {
    %c0_i32 = arith.constant 0 : i32
    %c0_i32_0 = arith.constant 0 : i32
    %c0_i32_1 = arith.constant 0 : i32
    return %c0_i32, %c0_i32_0 : i32, i32
  }
}

module attributes {stable_mosaic.version = 11 : i64} {
  func.func @_embed_proj_kernel(%arg0: i32, %arg1: memref<20x32xbf16, #tpu.memory_space<vmem>>, %arg2: memref<32x32xbf16, #tpu.memory_space<vmem>>, %arg3: memref<1x32xf32, #tpu.memory_space<vmem>>, %arg4: memref<20x32xbf16, #tpu.memory_space<vmem>>) attributes {dimension_semantics = [#tpu.dimension_semantics<parallel>], iteration_bounds = array<i64: 1>, scalar_prefetch = 0 : i64, scratch_operands = 0 : i64, tpu.core_type = #tpu.core_type<tc>, window_params = [{transform_indices = @transform_0, window_bounds = array<i64: 20, 32>}, {pipeline_mode = #tpu.pipeline_mode<synchronous>, transform_indices = @transform_1, window_bounds = array<i64: 32, 32>}, {pipeline_mode = #tpu.pipeline_mode<synchronous>, transform_indices = @transform_2, window_bounds = array<i64: 1, 32>}, {transform_indices = @transform_3, window_bounds = array<i64: 20, 32>}]} {
    %c0 = arith.constant 0 : index
    %c0_0 = arith.constant 0 : index
    %0 = vector.load %arg1[%c0, %c0_0] : memref<20x32xbf16, #tpu.memory_space<vmem>>, vector<20x32xbf16>
    %c0_1 = arith.constant 0 : index
    %c0_2 = arith.constant 0 : index
    %1 = vector.load %arg2[%c0_1, %c0_2] : memref<32x32xbf16, #tpu.memory_space<vmem>>, vector<32x32xbf16>
    %cst = arith.constant dense<0.000000e+00> : vector<20x32xf32>
    %2 = tpu.matmul %0, %1, %cst {dimension_numbers = #tpu.dot_dimension_numbers<[1], [0], [0], [1], [0, 0, 1, 1], [], []>} : vector<20x32xbf16>, vector<32x32xbf16>, vector<20x32xf32> -> vector<20x32xf32>
    %c0_3 = arith.constant 0 : index
    %c0_4 = arith.constant 0 : index
    %3 = vector.load %arg3[%c0_3, %c0_4] : memref<1x32xf32, #tpu.memory_space<vmem>>, vector<1x32xf32>
    %4 = vector.broadcast %3 : vector<1x32xf32> to vector<20x32xf32>
    %5 = arith.addf %2, %4 : vector<20x32xf32>
    %6 = arith.truncf %5 : vector<20x32xf32> to vector<20x32xbf16>
    %c0_5 = arith.constant 0 : index
    %c0_6 = arith.constant 0 : index
    %7 = vector.load %arg4[%c0_5, %c0_6] : memref<20x32xbf16, #tpu.memory_space<vmem>>, vector<20x32xbf16>
    tpu.vector_store %arg4[%c0_5, %c0_6], %6 {strides = array<i32>} : memref<20x32xbf16, #tpu.memory_space<vmem>>, vector<20x32xbf16>,
    return
  }
  func.func @transform_0(%arg0: i32) -> (i32, i32) {
    %c0_i32 = arith.constant 0 : i32
    %c0_i32_0 = arith.constant 0 : i32
    return %arg0, %c0_i32 : i32, i32
  }
  func.func @transform_1(%arg0: i32) -> (i32, i32) {
    %c0_i32 = arith.constant 0 : i32
    %c0_i32_0 = arith.constant 0 : i32
    %c0_i32_1 = arith.constant 0 : i32
    return %c0_i32, %c0_i32_0 : i32, i32
  }
  func.func @transform_2(%arg0: i32) -> (i32, i32) {
    %c0_i32 = arith.constant 0 : i32
    %c0_i32_0 = arith.constant 0 : i32
    %c0_i32_1 = arith.constant 0 : i32
    return %c0_i32, %c0_i32_0 : i32, i32
  }
  func.func @transform_3(%arg0: i32) -> (i32, i32) {
    %c0_i32 = arith.constant 0 : i32
    %c0_i32_0 = arith.constant 0 : i32
    return %arg0, %c0_i32 : i32, i32
  }
}

module attributes {stable_mosaic.version = 11 : i64} {
  func.func @_decoder_rnn_kernel(%arg0: i32, %arg1: memref<2x32xf32, #tpu.memory_space<vmem>>, %arg2: memref<1x2x32xbf16, #tpu.memory_space<vmem>>, %arg3: memref<32x32xbf16, #tpu.memory_space<vmem>>, %arg4: memref<8x2x32xbf16, #tpu.memory_space<vmem>>, %arg5: memref<2x32xf32, #tpu.memory_space<vmem>>) attributes {dimension_semantics = [#tpu.dimension_semantics<arbitrary>], iteration_bounds = array<i64: 8>, scalar_prefetch = 0 : i64, scratch_operands = 1 : i64, tpu.core_type = #tpu.core_type<tc>, window_params = [{pipeline_mode = #tpu.pipeline_mode<synchronous>, transform_indices = @transform_0, window_bounds = array<i64: 2, 32>}, {transform_indices = @transform_1, window_bounds = array<i64: 1, 2, 32>}, {pipeline_mode = #tpu.pipeline_mode<synchronous>, transform_indices = @transform_2, window_bounds = array<i64: 32, 32>}, {pipeline_mode = #tpu.pipeline_mode<synchronous>, transform_indices = @transform_3, window_bounds = array<i64: 8, 2, 32>}]} {
    %c0_i32 = arith.constant 0 : i32
    %0 = arith.cmpi eq, %arg0, %c0_i32 : i32
    %1 = arith.extui %0 : i1 to i32
    %c0_i32_0 = arith.constant 0 : i32
    %2 = arith.cmpi ne, %1, %c0_i32_0 : i32
    scf.if %2 {
      %c0_11 = arith.constant 0 : index
      %c0_12 = arith.constant 0 : index
      %18 = vector.load %arg1[%c0_11, %c0_12] : memref<2x32xf32, #tpu.memory_space<vmem>>, vector<2x32xf32>
      %c0_13 = arith.constant 0 : index
      %c0_14 = arith.constant 0 : index
      %19 = vector.load %arg5[%c0_13, %c0_14] : memref<2x32xf32, #tpu.memory_space<vmem>>, vector<2x32xf32>
      tpu.vector_store %arg5[%c0_13, %c0_14], %18 {strides = array<i32>} : memref<2x32xf32, #tpu.memory_space<vmem>>, vector<2x32xf32>,
    } else {
    }
    %c0 = arith.constant 0 : index
    %c0_1 = arith.constant 0 : index
    %c0_2 = arith.constant 0 : index
    %3 = vector.load %arg2[%c0, %c0_1, %c0_2] : memref<1x2x32xbf16, #tpu.memory_space<vmem>>, vector<1x2x32xbf16>
    %4 = vector.shape_cast %3 : vector<1x2x32xbf16> to vector<2x32xbf16>
    %5 = arith.extf %4 : vector<2x32xbf16> to vector<2x32xf32>
    %c0_3 = arith.constant 0 : index
    %c0_4 = arith.constant 0 : index
    %6 = vector.load %arg5[%c0_3, %c0_4] : memref<2x32xf32, #tpu.memory_space<vmem>>, vector<2x32xf32>
    %7 = arith.truncf %6 : vector<2x32xf32> to vector<2x32xbf16>
    %c0_5 = arith.constant 0 : index
    %c0_6 = arith.constant 0 : index
    %8 = vector.load %arg3[%c0_5, %c0_6] : memref<32x32xbf16, #tpu.memory_space<vmem>>, vector<32x32xbf16>
    %cst = arith.constant dense<0.000000e+00> : vector<2x32xf32>
    %9 = tpu.matmul %7, %8, %cst {dimension_numbers = #tpu.dot_dimension_numbers<[1], [0], [0], [1], [0, 0, 1, 1], [], []>} : vector<2x32xbf16>, vector<32x32xbf16>, vector<2x32xf32> -> vector<2x32xf32>
    %10 = arith.addf %5, %9 : vector<2x32xf32>
    %11 = math.tanh %10 : vector<2x32xf32>
    %c0_7 = arith.constant 0 : index
    %c0_8 = arith.constant 0 : index
    %12 = vector.load %arg5[%c0_7, %c0_8] : memref<2x32xf32, #tpu.memory_space<vmem>>, vector<2x32xf32>
    tpu.vector_store %arg5[%c0_7, %c0_8], %11 {strides = array<i32>} : memref<2x32xf32, #tpu.memory_space<vmem>>, vector<2x32xf32>,
    %13 = arith.truncf %11 : vector<2x32xf32> to vector<2x32xbf16>
    %14 = arith.index_cast %arg0 : i32 to index
    %c0_9 = arith.constant 0 : index
    %c0_10 = arith.constant 0 : index
    %15 = vector.load %arg4[%14, %c0_9, %c0_10] : memref<8x2x32xbf16, #tpu.memory_space<vmem>>, vector<1x2x32xbf16>
    %16 = vector.shape_cast %15 : vector<1x2x32xbf16> to vector<2x32xbf16>
    %17 = vector.shape_cast %13 : vector<2x32xbf16> to vector<1x2x32xbf16>
    tpu.vector_store %arg4[%14, %c0_9, %c0_10], %17 {strides = array<i32>} : memref<8x2x32xbf16, #tpu.memory_space<vmem>>, vector<1x2x32xbf16>,
    return
  }
  func.func @transform_0(%arg0: i32) -> (i32, i32) {
    %c0_i32 = arith.constant 0 : i32
    %c0_i32_0 = arith.constant 0 : i32
    %c0_i32_1 = arith.constant 0 : i32
    return %c0_i32, %c0_i32_0 : i32, i32
  }
  func.func @transform_1(%arg0: i32) -> (i32, i32, i32) {
    %c0_i32 = arith.constant 0 : i32
    %c0_i32_0 = arith.constant 0 : i32
    %c0_i32_1 = arith.constant 0 : i32
    return %arg0, %c0_i32, %c0_i32_0 : i32, i32, i32
  }
  func.func @transform_2(%arg0: i32) -> (i32, i32) {
    %c0_i32 = arith.constant 0 : i32
    %c0_i32_0 = arith.constant 0 : i32
    %c0_i32_1 = arith.constant 0 : i32
    return %c0_i32, %c0_i32_0 : i32, i32
  }
  func.func @transform_3(%arg0: i32) -> (i32, i32, i32) {
    %c0_i32 = arith.constant 0 : i32
    %c0_i32_0 = arith.constant 0 : i32
    %c0_i32_1 = arith.constant 0 : i32
    %c0_i32_2 = arith.constant 0 : i32
    return %c0_i32, %c0_i32_0, %c0_i32_1 : i32, i32, i32
  }
}

module attributes {stable_mosaic.version = 11 : i64} {
  func.func @_attention_kernel(%arg0: i32, %arg1: i32, %arg2: memref<1x8x32xbf16, #tpu.memory_space<vmem>>, %arg3: memref<1x8x32xbf16, #tpu.memory_space<vmem>>, %arg4: memref<1x1x8xf32, #tpu.memory_space<vmem>>, %arg5: memref<32x32xbf16, #tpu.memory_space<vmem>>, %arg6: memref<32x32xbf16, #tpu.memory_space<vmem>>, %arg7: memref<1x8x32xf32, #tpu.memory_space<vmem>>, %arg8: memref<1x8x8xf32, #tpu.memory_space<vmem>>) attributes {dimension_semantics = [#tpu.dimension_semantics<parallel>, #tpu.dimension_semantics<parallel>], iteration_bounds = array<i64: 2, 1>, scalar_prefetch = 0 : i64, scratch_operands = 0 : i64, tpu.core_type = #tpu.core_type<tc>, window_params = [{transform_indices = @transform_0, window_bounds = array<i64: 1, 8, 32>}, {transform_indices = @transform_1, window_bounds = array<i64: 1, 8, 32>}, {transform_indices = @transform_2, window_bounds = array<i64: 1, 1, 8>}, {pipeline_mode = #tpu.pipeline_mode<synchronous>, transform_indices = @transform_3, window_bounds = array<i64: 32, 32>}, {pipeline_mode = #tpu.pipeline_mode<synchronous>, transform_indices = @transform_4, window_bounds = array<i64: 32, 32>}, {transform_indices = @transform_5, window_bounds = array<i64: 1, 8, 32>}, {transform_indices = @transform_6, window_bounds = array<i64: 1, 8, 8>}]} {
    %c0 = arith.constant 0 : index
    %c0_0 = arith.constant 0 : index
    %c0_1 = arith.constant 0 : index
    %0 = vector.load %arg2[%c0, %c0_0, %c0_1] : memref<1x8x32xbf16, #tpu.memory_space<vmem>>, vector<1x8x32xbf16>
    %1 = vector.shape_cast %0 : vector<1x8x32xbf16> to vector<8x32xbf16>
    %c0_2 = arith.constant 0 : index
    %c0_3 = arith.constant 0 : index
    %c0_4 = arith.constant 0 : index
    %2 = vector.load %arg3[%c0_2, %c0_3, %c0_4] : memref<1x8x32xbf16, #tpu.memory_space<vmem>>, vector<1x8x32xbf16>
    %3 = vector.shape_cast %2 : vector<1x8x32xbf16> to vector<8x32xbf16>
    %4 = tpu.transpose %3, [1, 0] : vector<8x32xbf16> -> vector<32x8xbf16>
    %cst = arith.constant dense<0.000000e+00> : vector<8x8xf32>
    %5 = tpu.matmul %1, %4, %cst {dimension_numbers = #tpu.dot_dimension_numbers<[1], [0], [0], [1], [0, 0, 1, 1], [], []>} : vector<8x32xbf16>, vector<32x8xbf16>, vector<8x8xf32> -> vector<8x8xf32>
    %c0_5 = arith.constant 0 : index
    %c0_6 = arith.constant 0 : index
    %c0_7 = arith.constant 0 : index
    %6 = vector.load %arg4[%c0_5, %c0_6, %c0_7] : memref<1x1x8xf32, #tpu.memory_space<vmem>>, vector<1x1x8xf32>
    %7 = vector.shape_cast %6 : vector<1x1x8xf32> to vector<1x8xf32>
    %8 = vector.broadcast %7 : vector<1x8xf32> to vector<8x8xf32>
    %9 = arith.addf %5, %8 : vector<8x8xf32>
    %cst_8 = arith.constant dense<0xFF800000> : vector<8xf32>
    %10 = vector.multi_reduction <maximumf>, %9, %cst_8 [1] : vector<8x8xf32> to vector<8xf32>
    %11 = vector.shape_cast %10 : vector<8xf32> to vector<8x1xf32>
    %12 = vector.broadcast %11 : vector<8x1xf32> to vector<8x8xf32>
    %13 = arith.subf %9, %12 : vector<8x8xf32>
    %14 = math.exp %13 : vector<8x8xf32>
    %cst_9 = arith.constant dense<0.000000e+00> : vector<8xf32>
    %15 = vector.multi_reduction <add>, %14, %cst_9 [1] : vector<8x8xf32> to vector<8xf32>
    %16 = vector.shape_cast %15 : vector<8xf32> to vector<8x1xf32>
    %17 = tpu.reciprocal %16 {approx = true} : vector<8x1xf32> -> vector<8x1xf32>
    %18 = vector.broadcast %17 : vector<8x1xf32> to vector<8x8xf32>
    %19 = arith.mulf %14, %18 : vector<8x8xf32>
    %20 = arith.truncf %19 : vector<8x8xf32> to vector<8x8xbf16>
    %cst_10 = arith.constant dense<0.000000e+00> : vector<8x32xf32>
    %21 = tpu.matmul %20, %3, %cst_10 {dimension_numbers = #tpu.dot_dimension_numbers<[1], [0], [0], [1], [0, 0, 1, 1], [], []>} : vector<8x8xbf16>, vector<8x32xbf16>, vector<8x32xf32> -> vector<8x32xf32>
    %22 = arith.truncf %21 : vector<8x32xf32> to vector<8x32xbf16>
    %c0_11 = arith.constant 0 : index
    %c0_12 = arith.constant 0 : index
    %23 = vector.load %arg5[%c0_11, %c0_12] : memref<32x32xbf16, #tpu.memory_space<vmem>>, vector<32x32xbf16>
    %cst_13 = arith.constant dense<0.000000e+00> : vector<8x32xf32>
    %24 = tpu.matmul %22, %23, %cst_13 {dimension_numbers = #tpu.dot_dimension_numbers<[1], [0], [0], [1], [0, 0, 1, 1], [], []>} : vector<8x32xbf16>, vector<32x32xbf16>, vector<8x32xf32> -> vector<8x32xf32>
    %c0_14 = arith.constant 0 : index
    %c0_15 = arith.constant 0 : index
    %25 = vector.load %arg6[%c0_14, %c0_15] : memref<32x32xbf16, #tpu.memory_space<vmem>>, vector<32x32xbf16>
    %cst_16 = arith.constant dense<0.000000e+00> : vector<8x32xf32>
    %26 = tpu.matmul %1, %25, %cst_16 {dimension_numbers = #tpu.dot_dimension_numbers<[1], [0], [0], [1], [0, 0, 1, 1], [], []>} : vector<8x32xbf16>, vector<32x32xbf16>, vector<8x32xf32> -> vector<8x32xf32>
    %27 = arith.addf %24, %26 : vector<8x32xf32>
    %28 = math.tanh %27 : vector<8x32xf32>
    %c0_17 = arith.constant 0 : index
    %c0_18 = arith.constant 0 : index
    %c0_19 = arith.constant 0 : index
    %29 = vector.load %arg7[%c0_17, %c0_18, %c0_19] : memref<1x8x32xf32, #tpu.memory_space<vmem>>, vector<1x8x32xf32>
    %30 = vector.shape_cast %29 : vector<1x8x32xf32> to vector<8x32xf32>
    %31 = vector.shape_cast %28 : vector<8x32xf32> to vector<1x8x32xf32>
    tpu.vector_store %arg7[%c0_17, %c0_18, %c0_19], %31 {strides = array<i32>} : memref<1x8x32xf32, #tpu.memory_space<vmem>>, vector<1x8x32xf32>,
    %c0_20 = arith.constant 0 : index
    %c0_21 = arith.constant 0 : index
    %c0_22 = arith.constant 0 : index
    %32 = vector.load %arg8[%c0_20, %c0_21, %c0_22] : memref<1x8x8xf32, #tpu.memory_space<vmem>>, vector<1x8x8xf32>
    %33 = vector.shape_cast %32 : vector<1x8x8xf32> to vector<8x8xf32>
    %34 = vector.shape_cast %19 : vector<8x8xf32> to vector<1x8x8xf32>
    tpu.vector_store %arg8[%c0_20, %c0_21, %c0_22], %34 {strides = array<i32>} : memref<1x8x8xf32, #tpu.memory_space<vmem>>, vector<1x8x8xf32>,
    return
  }
  func.func @transform_0(%arg0: i32, %arg1: i32) -> (i32, i32, i32) {
    %c0_i32 = arith.constant 0 : i32
    %c0_i32_0 = arith.constant 0 : i32
    return %arg0, %arg1, %c0_i32 : i32, i32, i32
  }
  func.func @transform_1(%arg0: i32, %arg1: i32) -> (i32, i32, i32) {
    %c0_i32 = arith.constant 0 : i32
    %c0_i32_0 = arith.constant 0 : i32
    %c0_i32_1 = arith.constant 0 : i32
    return %arg0, %c0_i32, %c0_i32_0 : i32, i32, i32
  }
  func.func @transform_2(%arg0: i32, %arg1: i32) -> (i32, i32, i32) {
    %c0_i32 = arith.constant 0 : i32
    %c0_i32_0 = arith.constant 0 : i32
    %c0_i32_1 = arith.constant 0 : i32
    return %arg0, %c0_i32, %c0_i32_0 : i32, i32, i32
  }
  func.func @transform_3(%arg0: i32, %arg1: i32) -> (i32, i32) {
    %c0_i32 = arith.constant 0 : i32
    %c0_i32_0 = arith.constant 0 : i32
    %c0_i32_1 = arith.constant 0 : i32
    return %c0_i32, %c0_i32_0 : i32, i32
  }
  func.func @transform_4(%arg0: i32, %arg1: i32) -> (i32, i32) {
    %c0_i32 = arith.constant 0 : i32
    %c0_i32_0 = arith.constant 0 : i32
    %c0_i32_1 = arith.constant 0 : i32
    return %c0_i32, %c0_i32_0 : i32, i32
  }
  func.func @transform_5(%arg0: i32, %arg1: i32) -> (i32, i32, i32) {
    %c0_i32 = arith.constant 0 : i32
    %c0_i32_0 = arith.constant 0 : i32
    return %arg0, %arg1, %c0_i32 : i32, i32, i32
  }
  func.func @transform_6(%arg0: i32, %arg1: i32) -> (i32, i32, i32) {
    %c0_i32 = arith.constant 0 : i32
    %c0_i32_0 = arith.constant 0 : i32
    return %arg0, %arg1, %c0_i32 : i32, i32, i32
  }
}

</mosaic_0001>

<bundles_post_ra>
// kernel: nmt_forward.6
= control target key start
LH: loop header
LB: loop body
LE: loop exit
PB: predicated region body
PF: predicated region fallthrough
CT: control target
= control target key end

     0   :  { %vm46_vm0 = vcmask 261120   ;;  %vm74_vm1 = vcmask 257024   ;;  %vm77_vm2 = vcmask 254976   ;;  %s147_s1 = inlined_call_operand.vmem [shape: bf16[32,32], index: 1, kind: input, shape index: {}]   ;;  %s148_s0 = inlined_call_operand.vmem [shape: bf16[20,32], index: 0, kind: input, shape index: {}]   ;;  %s149_s2 = inlined_call_operand.vmem [shape: f32[1,32], index: 2, kind: input, shape index: {}]   ;;  %s150_s3 = inlined_call_operand.vmem [shape: bf16[20,32], index: 3, kind: output, shape index: {}]  }
   0x1   :  { %v99_v0 = vld [vmem:[%s147_s1 + $0x8] sm:$0xff]  ;;  %v98_v2 = vld [vmem:[%s147_s1] sm:$0xff] }
   0x2   :  { %v17_v1 = vld [vmem:[%s148_s0 + $0x8] sm:$0x3]  ;;  %59 = vmatpush.bf16.msra.mxu0 %v99_v0  ;;  %100 = vmatpush.bf16.msra.mxu1 %v99_v0  ;;  %v97_v4 = vld [vmem:[%s148_s0] sm:$0xff] }
   0x3   :  { %v31_v3 = vunpack.c.l.b16 %v17_v1  ;;  %v102_v6 = vld [vmem:[%s149_s2] ss:$0 sm:$0xff] }
   0x5   :  { %v33_v5 = vpack.c.b16 %v31_v3, %v31_v3 }
   0x6   :  { %60 = vmatpush.bf16.msra.mxu0 %v98_v2  ;;  %101 = vmatpush.bf16.msra.mxu1 %v98_v2 }
   0x9   :  { %95 = vmatmul.msk.bf16.vlgmr.msra.gmra.mxu0 %vm46_vm0, %v97_v4  ;;  %96 = vmatmul.msk.bf16.vlgmr.msra.gmra.mxu1 %vm46_vm0, %v33_v5 }
  0x86   :  { %v62_v7 = vpop.f32.mrf.mxu0  ;;  %v67_v8 = vpop.f32.mrf.mxu1 }
  0x87   :  { %v63_v9 = vadd.f32 %v102_v6, %v62_v7  ;;  %v68_v10 = vadd.f32 %v102_v6, %v67_v8 }
  0x89   :  { %v71_v11 = vpack.c.bf16 %v63_v9, %v63_v9  ;;  %v73_v12 = vpack.c.bf16 %v68_v10, %v68_v10 }
  0x8b   :  { %75 = vst.msk [vmem:[%s150_s3] sm:$0xf] %vm74_vm1, %v71_v11 }
  0x8c   :  { %78 = vst.msk [vmem:[%s150_s3 + $0x8] sm:$0x3] %vm77_vm2, %v73_v12 }
  0x8e   :  { %v64_v13 = vpop.f32.mrf.mxu0  ;;  %v69_v14 = vpop.f32.mrf.mxu1 }
  0x8f   :  { %v65_v15 = vadd.f32 %v102_v6, %v64_v13 }
  0x91   :  { %v72_v16 = vpack.c.bf16 %v65_v15, %v65_v15 }
  0x93   :  { %76 = vst.msk [vmem:[%s150_s3 + $0x4] sm:$0xf] %vm74_vm1, %v72_v16 }

// kernel: nmt_forward.8
= control target key start
LH: loop header
LB: loop body
LE: loop exit
PB: predicated region body
PF: predicated region fallthrough
CT: control target
= control target key end

     0   :  { %s285_s12 = smov 0   ;;  %s317_s0 = inlined_call_operand.vmem [shape: f32[2,32], index: 0, kind: input, shape index: {}]   ;;  %s318_s1 = inlined_call_operand.vmem [shape: bf16[8,2,32], index: 1, kind: input, shape index: {}]   ;;  %s319_s2 = inlined_call_operand.vmem [shape: bf16[32,32], index: 2, kind: input, shape index: {}]   ;;  %s320_s3 = inlined_call_operand.vmem [shape: bf16[8,2,32], index: 3, kind: output, shape index: {}]  }
   0x1 LB: > { %s291_s13 = sadd.s32 4294967295, %s263_s12   ;;  %p232_p0 = scmp.ge.s32.totalorder %s263_s12, 1  ;;  %s263_s12 = sphi %s285_s12, %s13_s12  }
   0x2   : > { %p130_p1 = scmp.lt.s32.totalorder %s263_s12, 9 }
   0x4   : > { %p131_p2 = pnand %p232_p0, %p130_p1 }
   0x5   : > { %p147_p3 = scmp.lt.s32.totalorder (!%p131_p2), %s291_s13, 7  ;;  %p233_p4 = scmp.ne.s32.totalorder (!%p131_p2), %s291_s13, 0 }
   0x6   : > { %134 = sbr.rel (%p131_p2) target bundleno = 166 (0xa6), region = 32 }
   0xb   : > { %s148_s14 = scalar_select %p147_p3, %s291_s13, 7 }
   0xc   : > { %154 = sbr.rel (%p233_p4) target bundleno = 19 (0x13), region = 36 }
   0xd   : > { %s149_s17 = scalar_lea.vmem %s318_s1, %s148_s14 }
  0x11   : > { %v155_v0 = vld [vmem:[%s317_s0] sm:$0x3]  ;;  %vm156_vm0 = vcmask 254976  }
  0x12   : > { %157 = vst.msk [vmem:[#allocation2] sm:$0x3] %vm156_vm0, %v155_v0 }
  0x13 PF: > { %v246_v1 = vld [vmem:[%s319_s2 + $0x8] sm:$0xff]  ;;  %v245_v2 = vld [vmem:[%s319_s2] sm:$0xff]  ;;  %vm178_vm1 = vcmask 261120   ;;  %vm197_vm2 = vcmask 254976   ;;  %s200_s26 = scalar_lea.vmem %s320_s3, %s291_s13  ;;  %vm201_vm3 = vcmask 253952  }
  0x14   : > { %188 = vmatpush.bf16.msra.mxu0 %v246_v1  ;;  %v158_v5 = vld [vmem:[%s149_s17] sm:$0x1] }
  0x15   : > { %v159_v6 = vunpack.c.l.bf16 %v158_v5 }
  0x18   : > { %189 = vmatpush.bf16.msra.mxu0 %v245_v2 }
  0x19   : > { %v160_v3 = vld [vmem:[#allocation2] sm:$0x3] }
  0x1a   : > { %v161_v4 = vpack.c.bf16 %v160_v3, %v160_v3 }
  0x1c   : > { %242 = vmatmul.msk.bf16.vlgmr.msra.gmra.mxu0 %vm178_vm1, %v161_v4 }
  0x99   : > { %v191_v7 = vpop.f32.mrf.mxu0 }
  0x9a   : > { %v195_v8 = vadd.f32 %v191_v7, %v159_v6 }
  0x9c   : > { %255 = vtanh.f32 %v195_v8 }
  0xa1   : > { %v193_v9 = vpop.f32.mrf.mxu0 }
  0xa2   : > { %v256_v10 = vpop.eup %255 }
  0xa3   : > { %198 = vst.msk [vmem:[#allocation2] sm:$0x3] %vm197_vm2, %v256_v10  ;;  %v199_v11 = vpack.c.bf16 %v256_v10, %v256_v10 }
  0xa5   : > { %202 = vst.msk [vmem:[%s200_s26] sm:$0x1] %vm201_vm3, %v199_v11 }
  0xa6 PF: > { %s13_s12 = sadd.s32 1, %s263_s12  }
  0xa7   : > { %p10_p5 = scmp.ge.s32.totalorder %s13_s12, 10  }
  0xa9   :  { %12 = sbr.rel (!%p10_p5) target bundleno = 1 (0x1), region = 63 }

// kernel: nmt_forward.5
= control target key start
LH: loop header
LB: loop body
LE: loop exit
PB: predicated region body
PF: predicated region fallthrough
CT: control target
= control target key end

     0   :  { %vm42_vm0 = vcmask 261120   ;;  %vm62_vm1 = vcmask 257024   ;;  %s124_s1 = inlined_call_operand.vmem [shape: bf16[32,32], index: 1, kind: input, shape index: {}]   ;;  %s125_s2 = inlined_call_operand.vmem [shape: f32[1,32], index: 2, kind: input, shape index: {}]   ;;  %s126_s0 = inlined_call_operand.vmem [shape: bf16[16,32], index: 0, kind: input, shape index: {}]   ;;  %s127_s3 = inlined_call_operand.vmem [shape: bf16[16,32], index: 3, kind: output, shape index: {}]  }
   0x1   :  { %v84_v0 = vld [vmem:[%s124_s1 + $0x8] sm:$0xff]  ;;  %v83_v1 = vld [vmem:[%s124_s1] sm:$0xff] }
   0x2   :  { %52 = vmatpush.bf16.msra.mxu0 %v84_v0  ;;  %v82_v2 = vld [vmem:[%s126_s0] sm:$0xff] }
   0x3   :  { %v85_v3 = vld [vmem:[%s125_s2] ss:$0 sm:$0xff] }
   0x6   :  { %53 = vmatpush.bf16.msra.mxu0 %v83_v1 }
   0x9   :  { %81 = vmatmul.msk.bf16.vlgmr.msra.gmra.mxu0 %vm42_vm0, %v82_v2 }
  0x86   :  { %v55_v4 = vpop.f32.mrf.mxu0 }
  0x87   :  { %v56_v5 = vadd.f32 %v85_v3, %v55_v4 }
  0x89   :  { %v60_v6 = vpack.c.bf16 %v56_v5, %v56_v5 }
  0x8b   :  { %63 = vst.msk [vmem:[%s127_s3] sm:$0xf] %vm62_vm1, %v60_v6 }
  0x8e   :  { %v57_v7 = vpop.f32.mrf.mxu0 }
  0x8f   :  { %v58_v8 = vadd.f32 %v85_v3, %v57_v7 }
  0x91   :  { %v61_v9 = vpack.c.bf16 %v58_v8, %v58_v8 }
  0x93   :  { %64 = vst.msk [vmem:[%s127_s3 + $0x4] sm:$0xf] %vm62_vm1, %v61_v9 }

// kernel: nmt_forward.7
= control target key start
LH: loop header
LB: loop body
LE: loop exit
PB: predicated region body
PF: predicated region fallthrough
CT: control target
= control target key end

     0   :  { %s335_s15 = smov 0   ;;  %s371_s0 = inlined_call_operand.vmem [shape: bf16[8,2,32], index: 0, kind: input, shape index: {}]   ;;  %s372_s1 = inlined_call_operand.vmem [shape: bf16[32,32], index: 1, kind: input, shape index: {}]   ;;  %s373_s2 = inlined_call_operand.vmem [shape: s32[2,1], index: 2, kind: input, shape index: {}]   ;;  %s374_s3 = inlined_call_operand.vmem [shape: bf16[8,2,32], index: 3, kind: output, shape index: {0}]   ;;  %s375_s4 = inlined_call_operand.vmem [shape: f32[2,32], index: 4, kind: output, shape index: {1}]  }
   0x1 LB: > { %s341_s16 = sadd.s32 4294967295, %s306_s15   ;;  %p272_p0 = scmp.ge.s32.totalorder %s306_s15, 1  ;;  %s306_s15 = sphi %s335_s15, %s15_s15  }
   0x2   : > { %p153_p1 = scmp.lt.s32.totalorder %s306_s15, 9 }
   0x4   : > { %p154_p2 = pnand %p272_p0, %p153_p1 }
   0x5   : > { %p172_p3 = scmp.lt.s32.totalorder (!%p154_p2), %s341_s16, 7  ;;  %p273_p4 = scmp.ne.s32.totalorder (!%p154_p2), %s341_s16, 0 }
   0x6   : > { %157 = sbr.rel (%p154_p2) target bundleno = 167 (0xa7), region = 32 }
   0xb   : > { %s173_s17 = scalar_select %p172_p3, %s341_s16, 7 }
   0xc   : > { %179 = sbr.rel (%p273_p4) target bundleno = 19 (0x13), region = 36 }
   0xd   : > { %s174_s20 = scalar_lea.vmem %s371_s0, %s173_s17 }
  0x11   : > { %vm180_vm0 = vcmask 254976   ;;  %v308_v0 = vmov 0.0  }
  0x12   : > { %181 = vst.msk [vmem:[#allocation2] sm:$0x3] %vm180_vm0, %v308_v0 }
  0x13 PF: > { %v286_v1 = vld [vmem:[%s372_s1 + $0x8] sm:$0xff]  ;;  %v222_v2 = vstv %s341_s16  ;;  %v309_v3 = vmov 0   ;;  %v221_v4 = vld [vmem:[%s373_s2] sm:$0x3]  ;;  %vm202_vm2 = vcmask 261120   ;;  %vm230_vm4 = vcmask 254976   ;;  %s233_s29 = scalar_lea.vmem %s374_s3, %s341_s16 }
  0x14   : > { %297 = vset.pattern.permute.xlu0 %v309_v3  ;;  %212 = vmatpush.bf16.msra.mxu0 %v286_v1  ;;  %v285_v5 = vld [vmem:[%s372_s1] sm:$0xff]  ;;  %vm223_vm1 = vcmp.gt.s32.totalorder %v221_v4, %v222_v2  ;;  %vm234_vm5 = vcmask 253952  }
  0x15   : > { %v224_v7 = vsel %vm223_vm1, 1, %v309_v3  ;;  %v183_v9 = vld [vmem:[%s174_s20] sm:$0x1] }
  0x16   : > { %226 = vperm.xlu0 %297, %v224_v7   ;;  %v184_v10 = vunpack.c.l.bf16 %v183_v9 }
  0x18   : > { %213 = vmatpush.bf16.msra.mxu0 %v285_v5 }
  0x19   : > { %v182_v6 = vld [vmem:[#allocation2] sm:$0x3] }
  0x1a   : > { %v185_v8 = vpack.c.bf16 %v182_v6, %v182_v6 }
  0x1c   : > { %282 = vmatmul.msk.bf16.vlgmr.msra.gmra.mxu0 %vm202_vm2, %v185_v8 }
  0x88   : > { %v227_v13 = vpop.permute.xlu0 %226 }
  0x89   : > { %vm228_vm3 = vcmp.eq.s32.totalorder %v227_v13, 1 }
  0x99   : > { %v215_v11 = vpop.f32.mrf.mxu0 }
  0x9a   : > { %v219_v12 = vadd.f32 %v215_v11, %v184_v10 }
  0x9c   : > { %298 = vtanh.f32 %v219_v12 }
  0xa1   : > { %v217_v14 = vpop.f32.mrf.mxu0 }
  0xa2   : > { %v299_v15 = vpop.eup %298 }
  0xa3   : > { %v229_v16 = vsel %vm228_vm3, %v299_v15, %v182_v6 }
  0xa4   : > { %231 = vst.msk [vmem:[#allocation2] sm:$0x3] %vm230_vm4, %v229_v16  ;;  %v232_v17 = vpack.c.bf16 %v229_v16, %v229_v16 }
  0xa5   : > { %236 = vst.msk [vmem:[%s375_s4] sm:$0x3] %vm230_vm4, %v229_v16 }
  0xa6   : > { %235 = vst.msk [vmem:[%s233_s29] sm:$0x1] %vm234_vm5, %v232_v17 }
  0xa7 PF: > { %s15_s15 = sadd.s32 1, %s306_s15  }
  0xa8   : > { %p12_p5 = scmp.ge.s32.totalorder %s15_s15, 10  }
  0xaa   :  { %14 = sbr.rel (!%p12_p5) target bundleno = 1 (0x1), region = 71 }

// kernel: nmt_forward.9
= control target key start
LH: loop header
LB: loop body
LE: loop exit
PB: predicated region body
PF: predicated region fallthrough
CT: control target
= control target key end

     0   :  { %s713_s21 = smov 0   ;;  %s715_s22 = smov 0   ;;  %s781_s0 = inlined_call_operand.vmem [shape: bf16[2,8,32], index: 0, kind: input, shape index: {}]   ;;  %s782_s1 = inlined_call_operand.vmem [shape: bf16[2,8,32], index: 1, kind: input, shape index: {}]   ;;  %s783_s2 = inlined_call_operand.vmem [shape: f32[2,1,8], index: 2, kind: input, shape index: {}]   ;;  %s784_s3 = inlined_call_operand.vmem [shape: bf16[32,32], index: 3, kind: input, shape index: {}]   ;;  %s785_s4 = inlined_call_operand.vmem [shape: bf16[32,32], index: 4, kind: input, shape index: {}]   ;;  %s786_s5 = inlined_call_operand.vmem [shape: f32[2,8,32], index: 5, kind: output, shape index: {0}]   ;;  %s787_s6 = inlined_call_operand.vmem [shape: f32[2,8,8], index: 6, kind: output, shape index: {1}]  }
   0x1   :  { %s717_s23 = smov 0  }
   0x2 LB: > { %s29_s24 = sadd.s32 1, %s672_s22  ;;  %p592_p0 = scmp.ge.s32.totalorder %s676_s23, 1  ;;  %s676_s23 = sphi %s717_s23, %s17_s23   ;;  %s672_s22 = sphi %s715_s22, %s789_s22   ;;  %s668_s21 = sphi %s713_s21, %s788_s21  }
   0x3   : > { %p31_p1 = scmp.ge.s32.totalorder %s29_s24, 2  ;;  %p252_p2 = scmp.lt.s32.totalorder %s676_s23, 3 }
   0x5   : > { %s791_s24 = smov (%p31_p1, %s29_s24), 0  ;;  %p253_p3 = pnand %p592_p0, %p252_p2 }
   0x6   : > { %p300_p4 = scmp.lt.s32.totalorder (!%p253_p3), %s668_s21, 1 }
   0x7   : > { %256 = sbr.rel (%p253_p3) target bundleno = 678 (0x2a6), region = 40 }
   0xc   : > { %s793_s21 = smov (!%p300_p4, %s668_s21), 1  ;;  %vm335_vm0 = vcmask 261120   ;;  %vm355_vm1 = vcmask 64512   ;;  %vm371_vm2 = vcmask 1043456   ;;  %v622_v14 = vld [vmem:[%s785_s4 + $0x8] sm:$0xff]  ;;  %v621_v16 = vld [vmem:[%s785_s4] sm:$0xff] }
   0xd   : > { %s593_s25 = sshll.u32 %s793_s21, 2  ;;  %s313_s7 = scalar_lea.vmem %s783_s2, %s793_s21  ;;  %v620_v15 = vld [vmem:[%s784_s3 + $0x8] sm:$0xff]  ;;  %414 = vmatpush.bf16.msra.mxu2 %v622_v14  ;;  %v619_v21 = vld [vmem:[%s784_s3] sm:$0xff] }
   0xe   : > { %s310_s28 = scalar_lea.vmem %s782_s1, %s593_s25  ;;  %s306_s10 = scalar_lea.vmem %s781_s0, %s593_s25  ;;  %v647_v3 = vld [vmem:[%s313_s7] ss:$0 sm:$0xff]  ;;  %442 = vmatpush.bf16.msra.mxu3 %v620_v15 }
   0xf   : > { %v330_v0 = vld [vmem:[%s310_s28] sm:$0xf]  ;;  %s595_s17 = sshll.u32 %s793_s21, 3 }
  0x10   : > { %v340_v1 = vsel %vm335_vm0, %v330_v0, 0  ;;  %v329_v2 = vld [vmem:[%s306_s10] sm:$0xf]  ;;  %v372_v13 = vsel %vm371_vm2, %v330_v0, 0  ;;  %s327_s20 = scalar_lea.vmem %s787_s6, %s595_s17  ;;  %s320_s28 = scalar_lea.vmem %s786_s5, %s595_s17 }
  0x11   : > { %349 = vmatpush.bf16.xpose.msra.mxu0 %v340_v1  ;;  %381 = vmatpush.bf16.msra.mxu1 %v372_v13 }
  0x12   : > { %415 = vmatpush.bf16.msra.mxu2 %v621_v16  ;;  %443 = vmatpush.bf16.msra.mxu3 %v619_v21 }
  0x15   : > { %607 = vmatmul.msk.bf16.vlgmr.msra.gmra.mxu2 %vm335_vm0, %v329_v2 }
  0x18   : > { %597 = vmatmul.msk.bf16.vlgmr.msra.gmra.mxu0 %vm335_vm0, %v329_v2 }
  0x95   : > { %v351_v4 = vpop.f32.mrf.mxu0 }
  0x96   : > { %v352_v5 = vadd.f32 %v647_v3, %v351_v4 }
  0x98   : > { %v356_v6 = vsel %vm355_vm1, %v352_v5, -inf  ;;  %v417_v22 = vpop.f32.mrf.mxu2 }
  0x99   : > { %357 = vmax.xlane.f32.xlu0 %v356_v6 }
  0x9d   : > { %v353_v7 = vpop.f32.mrf.mxu0 }
  0xa0   : > { %v419_v23 = vpop.f32.mrf.mxu2 }
 0x10c   : > { %v358_v8 = vpop.xlane.xlu0 %357 }
 0x10d   : > { %v359_v9 = vsub.f32 %v352_v5, %v358_v8 }
 0x10f   : > { %v360_v10 = vmul.f32 1.442695, %v359_v9 }
 0x111   : > { %648 = vpow2.f32 %v360_v10 }
 0x117   : > { %v649_v11 = vpop.eup %648 }
 0x118   : > { %v362_v12 = vsel %vm355_vm1, %v649_v11, 0.0 }
 0x119   : > { %363 = vadd.xlane.f32.xlu0 %v362_v12 }
 0x18c   : > { %v364_v17 = vpop.xlane.xlu0 %363 }
 0x18d   : > { %650 = vrcp.f32 %v364_v17 }
 0x193   : > { %v651_v18 = vpop.eup %650 }
 0x194   : > { %v366_v19 = vmul.f32 %v651_v18, %v649_v11 }
 0x196   : > { %v367_v20 = vpack.c.bf16 %v366_v19, %v366_v19  ;;  %451 = vst.msk [vmem:[%s327_s20] sm:$0xff] %vm355_vm1, %v366_v19 }
 0x198   : > { %598 = vmatmul.msk.bf16.vlgmr.msra.gmra.mxu1 %vm355_vm1, %v367_v20 }
 0x215   : > { %v383_v24 = vpop.f32.mrf.mxu1 }
 0x216   : > { %v387_v25 = vpack.c.bf16 %v383_v24, %v383_v24 }
 0x218   : > { %616 = vmatmul.msk.bf16.vlgmr.msra.gmra.mxu3 %vm335_vm0, %v387_v25 }
 0x21d   : > { %v385_v26 = vpop.f32.mrf.mxu1 }
 0x29b   : > { %v445_v27 = vpop.f32.mrf.mxu3 }
 0x29c   : > { %v446_v28 = vadd.f32 %v445_v27, %v417_v22 }
 0x29e   : > { %652 = vtanh.f32 %v446_v28 }
 0x2a3   : > { %v447_v29 = vpop.f32.mrf.mxu3 }
 0x2a4   : > { %v653_v30 = vpop.eup %652 }
 0x2a5   : > { %450 = vst.msk [vmem:[%s320_s28] sm:$0xff] %vm335_vm0, %v653_v30 }
 0x2a6 PF: > { %s17_s23 = sadd.s32 1, %s676_s23   ;;  %s788_s21 = smov %s672_s22 }
 0x2a7   : > { %p14_p5 = scmp.ge.s32.totalorder %s17_s23, 4   ;;  %s789_s22 = smov %s791_s24 }
 0x2a9   :  { %16 = sbr.rel (!%p14_p5) target bundleno = 2 (0x2), region = 88 }

</bundles_post_ra>
